<compile_context>
chip_gen: v6e
topology: v6e:2x2x1
jax: 0.10.0
libtpu: 0.0.40
codegen_flags: <defaults>
</compile_context>

<pallas_src>
import functools
import math

import jax
import jax.numpy as jnp
from jax.experimental import pallas as pl
from jax.experimental.pallas import tpu as pltpu

_LANE = 128
_MAX_TILE_SUBLANES = 2048   # 2048 x 128 f32 = 1 MiB per block


def _drop_path_kernel(keep_ref, x_ref, o_ref, *, inv_keep_prob):
    """One (sample, feature-tile) block: y = x * keep[b] / keep_prob."""
    b = pl.program_id(0)
    # keep_ref lives in SMEM (scalar prefetch); one scalar read + mul per step.
    scale = keep_ref[b].astype(jnp.float32) * inv_keep_prob
    o_ref[...] = x_ref[...] * scale.astype(o_ref.dtype)


def drop_path(x, seed, drop_prob=0.0, training=False):
    """Pallas TPU drop-path. `seed` is an int32 array of shape (1,) (or scalar)."""
    if drop_prob == 0.0 or not training:
        return x

    keep_prob = 1.0 - float(drop_prob)
    B = x.shape[0]
    F = math.prod(x.shape[1:])

    # Per-sample keep decision drawn once in the wrapper (tiny XLA op), exactly
    # mirroring torch.rand((B, 1, ..., 1)); passed to the kernel via SMEM.
    seed_scalar = jnp.asarray(seed, jnp.int32).reshape(())
    key = jax.random.PRNGKey(seed_scalar)
    u = jax.random.uniform(key, (B,), jnp.float32)
    keep_i32 = jnp.floor(keep_prob + u).astype(jnp.int32)   # 1 w.p. keep_prob, else 0

    # Lane-dense layout: (B, S, 128). Pad F only to the next multiple of 128
    # (zero pad for the common F % 128 == 0 case).
    S = pl.cdiv(F, _LANE)
    Fp = S * _LANE
    xf = x.reshape(B, F)
    if Fp != F:
        # TODO(synk): an in-kernel masked store on the last lane block would avoid
        # this extra HBM round trip for ragged F; it only triggers when F % 128 != 0.
        xf = jnp.pad(xf, ((0, 0), (0, Fp - F)))
    x3 = xf.reshape(B, S, _LANE)

    # Feature-tile size: biggest block up to 2048 sublanes; Pallas masks the ragged
    # edge block when tile_s does not divide S.
    tile_s = min(S, _MAX_TILE_SUBLANES)
    n_s = pl.cdiv(S, tile_s)
    # Megacore heuristic: keep at least ~4 parallel grid steps when B is tiny.
    while B * n_s < 4 and tile_s % 16 == 0 and tile_s >= 32:
        tile_s //= 2
        n_s = pl.cdiv(S, tile_s)

    y3 = pl.pallas_call(
        functools.partial(_drop_path_kernel, inv_keep_prob=1.0 / keep_prob),
        out_shape=jax.ShapeDtypeStruct((B, S, _LANE), x.dtype),
        grid_spec=pltpu.PrefetchScalarGridSpec(
            num_scalar_prefetch=1,
            grid=(B, n_s),
            in_specs=[
                pl.BlockSpec((1, tile_s, _LANE), lambda b, s, keep: (b, s, 0)),
            ],
            out_specs=pl.BlockSpec((1, tile_s, _LANE), lambda b, s, keep: (b, s, 0)),
        ),
        compiler_params=pltpu.CompilerParams(
            dimension_semantics=("parallel", "parallel")),
    )(keep_i32, x3)

    y = y3.reshape(B, Fp)
    if Fp != F:
        y = y[:, :F]
    return y.reshape(x.shape)


if __name__ == "__main__":
    B, C, H, W = 2, 4, 16, 16
    drop_prob = 0.25
    keep_prob = 1.0 - drop_prob

    key = jax.random.PRNGKey(0)
    kx, ks = jax.random.split(key)
    x = jax.random.normal(kx, (B, C, H, W), jnp.float32)
    seed = jax.random.randint(ks, (1,), 0, jnp.iinfo(jnp.int32).max, dtype=jnp.int32)

    fwd = jax.jit(functools.partial(drop_path, drop_prob=drop_prob, training=True))

    y = fwd(x, seed)
    jax.block_until_ready(y)
    assert y.shape == x.shape and y.dtype == x.dtype

    # Per-sample check: each sample is either dropped (all zeros) or kept and
    # rescaled by 1/keep_prob — exactly the DropPath contract.
    for b in range(B):
        yb = y[b].reshape(-1)
        kept = bool(jnp.allclose(yb, x[b].reshape(-1) / keep_prob, rtol=1e-5, atol=1e-5))
        dropped = bool(jnp.allclose(yb, 0.0))
        assert kept or dropped, f"sample {b}: neither kept nor dropped"

    # Eval / drop_prob == 0 paths are the identity.
    y_eval = drop_path(x, seed, drop_prob=drop_prob, training=False)
    assert bool(jnp.allclose(y_eval, x))
    y_p0 = drop_path(x, seed, drop_prob=0.0, training=True)
    assert bool(jnp.allclose(y_p0, x))

    # bf16 smoke test (store dtype preserved; dtype-native epilogue).
    y_bf16 = fwd(x.astype(jnp.bfloat16), seed)
    jax.block_until_ready(y_bf16)
    assert y_bf16.dtype == jnp.bfloat16 and y_bf16.shape == x.shape

    # Larger shape exercising the multi-tile (n_s > 1) feature grid and the
    # megacore split heuristic (F = 131072 -> S = 1024 -> 2 feature tiles).
    x_big = jax.random.normal(kx, (2, 32, 64, 64), jnp.float32)
    y_big = fwd(x_big, seed)
    jax.block_until_ready(y_big)
    for b in range(x_big.shape[0]):
        yb = y_big[b].reshape(-1)
        kept = bool(jnp.allclose(yb, x_big[b].reshape(-1) / keep_prob, rtol=1e-5, atol=1e-5))
        dropped = bool(jnp.allclose(yb, 0.0))
        assert kept or dropped, f"big sample {b}: neither kept nor dropped"

    print("KERNEL_OK")
</pallas_src>

<mosaic_0001>
module attributes {stable_mosaic.version = 11 : i64} {
  func.func @_drop_path_kernel(%arg0: i32, %arg1: i32, %arg2: memref<2xi32, #tpu.memory_space<smem>>, %arg3: memref<1x8x128xf32, #tpu.memory_space<vmem>>, %arg4: memref<1x8x128xf32, #tpu.memory_space<vmem>>) attributes {dimension_semantics = [#tpu.dimension_semantics<parallel>, #tpu.dimension_semantics<parallel>], iteration_bounds = array<i64: 2, 1>, scalar_prefetch = 1 : i64, scratch_operands = 0 : i64, tpu.core_type = #tpu.core_type<tc>, window_params = [{transform_indices = @transform_0, window_bounds = array<i64: 1, 8, 128>}, {transform_indices = @transform_1, window_bounds = array<i64: 1, 8, 128>}]} {
    %0 = arith.index_cast %arg0 : i32 to index
    %1 = memref.load %arg2[%0] : memref<2xi32, #tpu.memory_space<smem>>
    %2 = arith.sitofp %1 : i32 to f32
    %cst = arith.constant 1.33333337 : f32
    %3 = arith.mulf %2, %cst : f32
    %c0 = arith.constant 0 : index
    %c0_0 = arith.constant 0 : index
    %c0_1 = arith.constant 0 : index
    %4 = vector.load %arg3[%c0, %c0_0, %c0_1] : memref<1x8x128xf32, #tpu.memory_space<vmem>>, vector<1x8x128xf32>
    %5 = vector.broadcast %3 : f32 to vector<1x8x128xf32>
    %6 = arith.mulf %4, %5 : vector<1x8x128xf32>
    %c0_2 = arith.constant 0 : index
    %c0_3 = arith.constant 0 : index
    %c0_4 = arith.constant 0 : index
    %7 = vector.load %arg4[%c0_2, %c0_3, %c0_4] : memref<1x8x128xf32, #tpu.memory_space<vmem>>, vector<1x8x128xf32>
    tpu.vector_store %arg4[%c0_2, %c0_3, %c0_4], %6 {strides = array<i32>} : memref<1x8x128xf32, #tpu.memory_space<vmem>>, vector<1x8x128xf32>,
    return
  }
  func.func @transform_0(%arg0: i32, %arg1: i32, %arg2: memref<2xi32, #tpu.memory_space<smem>>) -> (i32, i32, i32) {
    %c0_i32 = arith.constant 0 : i32
    %c0_i32_0 = arith.constant 0 : i32
    return %arg0, %arg1, %c0_i32 : i32, i32, i32
  }
  func.func @transform_1(%arg0: i32, %arg1: i32, %arg2: memref<2xi32, #tpu.memory_space<smem>>) -> (i32, i32, i32) {
    %c0_i32 = arith.constant 0 : i32
    %c0_i32_0 = arith.constant 0 : i32
    return %arg0, %arg1, %c0_i32 : i32, i32, i32
  }
}

</mosaic_0001>

<bundles_post_ra>
// kernel: drop_path.1
= control target key start
LH: loop header
LB: loop body
LE: loop exit
PB: predicated region body
PF: predicated region fallthrough
CT: control target
= control target key end

     0   :  { %s343_s0 = inlined_call_operand.vmem [shape: s32[2], index: 0, kind: input, shape index: {}]   ;;  %s344_s1 = inlined_call_operand.vmem [shape: f32[2,8,128], index: 1, kind: input, shape index: {}]   ;;  %s345_s2 = inlined_call_operand.vmem [shape: f32[2,8,128], index: 2, kind: output, shape index: {}]  }
   0x1   :  { %s7_s11 = sshll.u32 %s343_s0, 4  ;;  %s8_s11 = int_to_ptr.vmem [resolvable:$true] %s7_s11 }
   0x2   :  { %s265_s12 = scalar_lea.vmem %s8_s11, 16  ;;  %p270_p1 = scmp.lt.s32.totalorder %s8_s11, %s8_s11 }
   0x3   :  { %p266_p0 = scmp.ne.s32.totalorder %s8_s11, %s265_s12  ;;  %p271_p2 = scmp.lt.s32.totalorder %s265_s12, %s265_s12 }
   0x5   :  { %p272_p3 = por %p271_p2, %p270_p1 }
   0x7   :  { %p273_p4 = pnand %p272_p3, %p266_p0 }
   0x9   :  { %276 = shalt.err (!%p273_p4)  }
   0xa   :  { %s303_s13 = smov [#allocation3]  }
   0xb   :  { %10 = dma.vmem_to_smem %s8_s11, 16, %s303_s13, [#allocation2] }
   0xc   :  { %289 = dma.done.wait [#allocation2], 16 }
   0xd   :  { %290 = vsyncadd [#allocation2], 4294967280 }
   0xe   :  { %12 = sfence }
   0xf   :  { %s322_s14 = smov 0   ;;  %s324_s15 = smov 0  }
  0x10   :  { %s326_s16 = smov 0  }
  0x11 LB: > { %s30_s0 = sadd.s32 1, %s297_s15  ;;  %p235_p5 = scmp.ge.s32.totalorder %s301_s16, 1  ;;  %s301_s16 = sphi %s326_s16, %s18_s16   ;;  %s297_s15 = sphi %s324_s15, %s347_s15   ;;  %s293_s14 = sphi %s322_s14, %s346_s14  }
  0x12   : > { %p32_p6 = scmp.ge.s32.totalorder %s30_s0, 2  ;;  %p112_p7 = scmp.lt.s32.totalorder %s301_s16, 3 }
  0x14   : > { %s349_s0 = smov (%p32_p6, %s30_s0), 0  ;;  %p113_p8 = pnand %p235_p5, %p112_p7 }
  0x15   : > { %p136_p9 = scmp.lt.s32.totalorder (!%p113_p8), %s293_s14, 1  ;;  %s150_s17 = sld [smem:[#allocation3 + %s293_s14]] (!%p113_p8) }
  0x16   : > { %116 = sbr.rel (%p113_p8) target bundleno = 35 (0x23), region = 24 }
  0x1b   : > { %s351_s14 = smov (!%p136_p9, %s293_s14), 1  ;;  %s151_s22 = scvt.s32.f32 %s150_s17 }
  0x1c   : > { %s236_s18 = sshll.u32 %s351_s14, 3 }
  0x1d   : > { %s142_s21 = scalar_lea.vmem %s344_s1, %s236_s18  ;;  %s152_s23 = smul.f32 1.3333334, %s151_s22 }
  0x1e   : > { %v153_v0 = vld [vmem:[%s142_s21] sm:$0xff]  ;;  %s149_s26 = scalar_lea.vmem %s345_s2, %s236_s18 }
  0x1f   : > { %v154_v1 = vstv %s152_s23 }
  0x20   : > { %v155_v2 = vmul.f32 %v154_v1, %v153_v0 }
  0x22   : > { %156 = vst [vmem:[%s149_s26] sm:$0xff] %v155_v2 }
  0x23 PF: > { %s18_s16 = sadd.s32 1, %s301_s16   ;;  %s346_s14 = smov %s297_s15 }
  0x24   : > { %p15_p10 = scmp.ge.s32.totalorder %s18_s16, 4   ;;  %s347_s15 = smov %s349_s0 }
  0x26   :  { %17 = sbr.rel (!%p15_p10) target bundleno = 17 (0x11), region = 54 }

</bundles_post_ra>
